<compile_context>
chip_gen: v6e
topology: v6e:2x2x1
jax: 0.10.0
libtpu: 0.0.40
codegen_flags: <defaults>
</compile_context>

<pallas_src>
import math
import functools

import jax
import jax.numpy as jnp
import numpy as np
from jax.experimental import pallas as pl
from jax.experimental.pallas import tpu as pltpu

NEG_INF = -1e30  # big negative used for masking (matches the additive causal mask)


# ----------------------------------------------------------------------------
# Tiling helpers
# ----------------------------------------------------------------------------
def _pick_tile(dim, cap, align):
    """Largest tile <= cap that divides `dim` and is a multiple of `align`
    (or the full dim if dim <= cap / nothing divides)."""
    if dim <= cap:
        return dim
    t = (cap // align) * align
    while t >= align:
        if dim % t == 0:
            return t
        t -= align
    # TODO(synk): pad-to-tile fallback for awkward (prime-ish) dims; returning the
    # full dim can exceed the VMEM budget on v7x (64 MiB physical).
    return dim


def _dtype_bytes(dt):
    return jnp.dtype(dt).itemsize


# ----------------------------------------------------------------------------
# Tiled linear:  y = x @ w_t   (w_t pre-transposed to (K, N)),
# optionally with a fused RoPE epilogue applied per head_dim group at the last k.
# ----------------------------------------------------------------------------
def _make_linear_kernel(*, rope, use_scratch, head_dim=None):
    def kernel(*refs):
        if rope:
            x_ref, w_ref, cos_ref, sin_ref = refs[:4]
            rest = refs[4:]
        else:
            x_ref, w_ref = refs[:2]
            rest = refs[2:]
        if use_scratch:
            o_ref, acc_ref = rest
        else:
            (o_ref,) = rest
            acc_ref = o_ref  # f32 output: accumulate in place, no extra scratch

        kk = pl.program_id(2)

        @pl.when(kk == 0)
        def _():
            acc_ref[...] = jnp.zeros_like(acc_ref)

        acc_ref[...] += jnp.dot(x_ref[...], w_ref[...],
                                preferred_element_type=jnp.float32)

        if rope or use_scratch:
            @pl.when(kk == pl.num_programs(2) - 1)
            def _():
                y = acc_ref[...]
                if rope:
                    half = head_dim // 2
                    cos = cos_ref[...]
                    sin = sin_ref[...]  # sign-folded: sin * [-1...,+1...]
                    for h in range(y.shape[1] // head_dim):
                        sl = slice(h * head_dim, (h + 1) * head_dim)
                        yh = y[:, sl]
                        o_ref[:, sl] = (
                            yh * cos + pltpu.roll(yh, shift=half, axis=1) * sin
                        ).astype(o_ref.dtype)
                else:
                    o_ref[...] = y.astype(o_ref.dtype)
    return kernel


def pallas_linear(x2d, w_t, *, cos=None, sin=None, head_dim=None,
                  tm=None, tn=None, tk=None):
    """x2d: (M, K), w_t: (K, N)  ->  (M, N) = x2d @ w_t.
    If cos/sin are given ((M, head_dim), sin sign-folded), RoPE is applied to each
    head_dim-wide output group in the last-k epilogue."""
    M, K = x2d.shape
    K2, N = w_t.shape
    assert K == K2
    rope = cos is not None

    align_m = 16 if x2d.dtype == jnp.bfloat16 else 8
    tm = _pick_tile(M, 512, align_m) if tm is None else tm
    if rope:
        assert N % head_dim == 0
        tn_align = head_dim if head_dim % 128 == 0 else max(head_dim, 128)
        tn = _pick_tile(N, 512, tn_align) if tn is None else tn
        assert tn % head_dim == 0
    else:
        tn = _pick_tile(N, 512, 128) if tn is None else tn
    tk = _pick_tile(K, 1024, 128) if tk is None else tk
    assert M % tm == 0 and N % tn == 0 and K % tk == 0
    grid = (M // tm, N // tn, K // tk)

    out_dtype = x2d.dtype
    use_scratch = out_dtype != jnp.float32

    in_specs = [
        pl.BlockSpec((tm, tk), lambda i, j, kk: (i, kk)),
        pl.BlockSpec((tk, tn), lambda i, j, kk: (kk, j)),
    ]
    args = [x2d, w_t]
    if rope:
        # cos/sin block index is constant across j/k -> stays VMEM-resident, no re-DMA
        in_specs += [
            pl.BlockSpec((tm, head_dim), lambda i, j, kk: (i, 0)),
            pl.BlockSpec((tm, head_dim), lambda i, j, kk: (i, 0)),
        ]
        args += [cos, sin]

    scratch = [pltpu.VMEM((tm, tn), jnp.float32)] if use_scratch else []

    # Explicit VMEM budget (double-buffered inputs + output + scratch), clamped so
    # it stays comfortable on v7x (64 MiB physical / 32 MiB default scoped).
    est = (2 * (tm * tk + tk * tn) * _dtype_bytes(x2d.dtype)
           + 2 * tm * tn * _dtype_bytes(out_dtype)
           + (tm * tn * 4 if use_scratch else 0)
           + (4 * tm * head_dim * 4 if rope else 0))
    vmem_limit = int(min(max(est + (8 << 20), 32 << 20), 48 << 20))

    kernel = _make_linear_kernel(rope=rope, use_scratch=use_scratch,
                                 head_dim=head_dim)
    return pl.pallas_call(
        kernel,
        out_shape=jax.ShapeDtypeStruct((M, N), out_dtype),
        grid=grid,
        in_specs=in_specs,
        out_specs=pl.BlockSpec((tm, tn), lambda i, j, kk: (i, j)),
        scratch_shapes=scratch,
        compiler_params=pltpu.CompilerParams(
            dimension_semantics=("parallel", "parallel", "arbitrary"),
            vmem_limit_bytes=vmem_limit),
    )(*args)


# ----------------------------------------------------------------------------
# Flash attention (GQA grouping, in-kernel causal mask, bf16 MXU / f32 softmax)
# q/k arrive already RoPE'd; 1/sqrt(head_dim) already folded into q.
# ----------------------------------------------------------------------------
def _flash_attn_kernel(q_ref, k_ref, v_ref, o_ref, q_scr, m_scr, l_scr, acc_scr,
                       *, g, head_dim, tq, tkv, causal, compute_dtype):
    # Block views (batch / kv-head dims squeezed):
    #   q_ref : (tq, g*head_dim)    k_ref, v_ref : (tkv, head_dim)
    #   o_ref : (tq, g*head_dim)
    qi = pl.program_id(2)
    ki = pl.program_id(3)

    @pl.when(ki == 0)
    def _init():
        # Head-major (g*tq, head_dim) bf16 copy of q, cached once per q block.
        for j in range(g):
            q_scr[j * tq:(j + 1) * tq, :] = (
                q_ref[:, j * head_dim:(j + 1) * head_dim].astype(compute_dtype))
        m_scr[...] = jnp.full_like(m_scr, NEG_INF)
        l_scr[...] = jnp.zeros_like(l_scr)
        acc_scr[...] = jnp.zeros_like(acc_scr)

    def _update(masked):
        k = k_ref[...].astype(compute_dtype)
        v = v_ref[...].astype(compute_dtype)

        # (g*tq, tkv) scores for the whole query-head group: bf16 MXU, f32 accum.
        s = jax.lax.dot_general(
            q_scr[...], k,
            dimension_numbers=(((1,), (1,)), ((), ())),
            preferred_element_type=jnp.float32)

        if masked:  # only built on blocks straddling the diagonal
            rows = jax.lax.broadcasted_iota(jnp.int32, (g * tq, tkv), 0)
            q_pos = qi * tq + jax.lax.rem(rows, tq)
            k_pos = ki * tkv + jax.lax.broadcasted_iota(jnp.int32, (g * tq, tkv), 1)
            s = jnp.where(q_pos >= k_pos, s, NEG_INF)

        # online softmax update (all stats kept in f32)
        m_prev = m_scr[...]
        m_new = jnp.maximum(m_prev, jnp.max(s, axis=-1, keepdims=True))
        alpha = jnp.exp(m_prev - m_new)
        p = jnp.exp(s - m_new)
        l_scr[...] = alpha * l_scr[...] + jnp.sum(p, axis=-1, keepdims=True)
        acc_scr[...] = alpha * acc_scr[...] + jax.lax.dot_general(
            p.astype(compute_dtype), v,
            dimension_numbers=(((1,), (0,)), ((), ())),
            preferred_element_type=jnp.float32)
        m_scr[...] = m_new

    if causal:
        needed = ki * tkv <= (qi + 1) * tq - 1           # block has work
        diagonal = (ki + 1) * tkv - 1 > qi * tq          # block straddles diagonal

        @pl.when(jnp.logical_and(needed, diagonal))
        def _():
            _update(True)

        @pl.when(jnp.logical_and(needed, jnp.logical_not(diagonal)))
        def _():
            _update(False)
    else:
        _update(False)

    @pl.when(ki == pl.num_programs(3) - 1)
    def _finalize():
        out = acc_scr[...] * pl.reciprocal(l_scr[...], approx=True)
        for j in range(g):
            o_ref[:, j * head_dim:(j + 1) * head_dim] = (
                out[j * tq:(j + 1) * tq, :].astype(o_ref.dtype))


def pallas_flash_attention(q, k, v, *, num_heads, num_kv_heads, head_dim,
                           causal=True, block_q=None, block_kv=None,
                           compute_dtype=jnp.bfloat16):
    """
    q       : (bsz, seq, num_heads    * head_dim)   -- already rope'd & pre-scaled
    k, v    : (bsz, seq, num_kv_heads * head_dim)   -- k already rope'd
    returns : (bsz, seq, num_heads * head_dim)
    """
    bsz, seq, _ = q.shape
    assert num_heads % num_kv_heads == 0
    g = num_heads // num_kv_heads
    align_q = 16 if q.dtype == jnp.bfloat16 else 8
    if block_q is None:
        cap_q = max(align_q, min(256, 512 // g))   # keep g*block_q ~ 256-512
        block_q = _pick_tile(seq, cap_q, align_q)
    if block_kv is None:
        block_kv = _pick_tile(seq, 512, 128)       # lane/MXU-width aligned
    assert seq % block_q == 0 and seq % block_kv == 0
    nq, nkv = seq // block_q, seq // block_kv
    gD = g * head_dim

    if causal:
        def kv_map(b, h, qi, ki):
            # Clamp above-diagonal (skipped) kv steps to the last block actually
            # needed for this q block -> those steps issue no new K/V DMA.
            last_needed = ((qi + 1) * block_q - 1) // block_kv
            return (b, jnp.minimum(ki, last_needed), h)
    else:
        def kv_map(b, h, qi, ki):
            return (b, ki, h)

    kernel = functools.partial(
        _flash_attn_kernel, g=g, head_dim=head_dim, tq=block_q, tkv=block_kv,
        causal=causal, compute_dtype=compute_dtype)

    return pl.pallas_call(
        kernel,
        out_shape=jax.ShapeDtypeStruct((bsz, seq, num_heads * head_dim), q.dtype),
        grid=(bsz, num_kv_heads, nq, nkv),
        in_specs=[
            pl.BlockSpec((None, block_q, gD), lambda b, h, qi, ki: (b, qi, h)),
            pl.BlockSpec((None, block_kv, head_dim), kv_map),
            pl.BlockSpec((None, block_kv, head_dim), kv_map),
        ],
        out_specs=pl.BlockSpec((None, block_q, gD), lambda b, h, qi, ki: (b, qi, h)),
        scratch_shapes=[
            pltpu.VMEM((g * block_q, head_dim), compute_dtype),  # bf16 q (head-major)
            pltpu.VMEM((g * block_q, 1), jnp.float32),           # running max m
            pltpu.VMEM((g * block_q, 1), jnp.float32),           # running sum l
            pltpu.VMEM((g * block_q, head_dim), jnp.float32),    # output accumulator
        ],
        compiler_params=pltpu.CompilerParams(
            dimension_semantics=("parallel", "parallel", "parallel", "arbitrary")),
    )(q, k, v)


# ----------------------------------------------------------------------------
# Module wrapper
# ----------------------------------------------------------------------------
class GemmaAttentionQKPallas:
    def __init__(self, hidden_size, num_heads, num_kv_heads, head_dim,
                 rope_theta=10000.0, key=None, dtype=jnp.float32):
        self.hidden_size = hidden_size
        self.num_heads = num_heads
        self.num_key_value_heads = num_kv_heads
        self.num_key_value_groups = num_heads // num_kv_heads
        self.head_dim = head_dim
        self.rope_theta = rope_theta
        self.dtype = dtype

        key = jax.random.PRNGKey(0) if key is None else key
        kq, kk, kv, ko = jax.random.split(key, 4)
        s = 0.02
        # torch.nn.Linear layout (out_features, in_features) -- kept for reference
        self.q_proj_w = (s * jax.random.normal(kq, (num_heads * head_dim, hidden_size))).astype(dtype)
        self.k_proj_w = (s * jax.random.normal(kk, (num_kv_heads * head_dim, hidden_size))).astype(dtype)
        self.v_proj_w = (s * jax.random.normal(kv, (num_kv_heads * head_dim, hidden_size))).astype(dtype)
        self.o_proj_w = (s * jax.random.normal(ko, (hidden_size, num_heads * head_dim))).astype(dtype)

        # One-time transposes to (K, N) for the natural MXU feed; 1/sqrt(head_dim)
        # folded into the q projection weights (RoPE is a rotation, scaling commutes).
        scale = 1.0 / math.sqrt(head_dim)
        self.q_proj_wt = (self.q_proj_w.astype(jnp.float32).T * scale).astype(dtype)
        self.k_proj_wt = self.k_proj_w.T
        self.v_proj_wt = self.v_proj_w.T
        self.o_proj_wt = self.o_proj_w.T

        # TODO(synk): quantize_bfp (4-bit BFP of key_states) depends on external
        # quant.block_quantize; quantize=False path is what is implemented here.
        # TODO(synk): reorder=True, past_key_value (Cache) and attention_dropout>0
        # paths are not exercised.

    def _rotary(self, position_ids):
        # Gemma rotary embedding (computed in f32): emb = concat(freqs, freqs)
        inv_freq = 1.0 / (self.rope_theta ** (
            jnp.arange(0, self.head_dim, 2, dtype=jnp.float32) / self.head_dim))
        freqs = position_ids.astype(jnp.float32)[..., None] * inv_freq[None, None, :]
        emb = jnp.concatenate([freqs, freqs], axis=-1)      # (bsz, seq, head_dim)
        return jnp.cos(emb), jnp.sin(emb)

    def __call__(self, hidden_states, attention_mask=None, position_ids=None,
                 block_q=None, block_kv=None):
        bsz, q_len, _ = hidden_states.shape
        x2d = hidden_states.reshape(bsz * q_len, self.hidden_size)

        # rotate_half(x)*sin == roll(x, D/2) * (sign*sin); sign folded into sin once.
        cos, sin = self._rotary(position_ids)                     # f32 (bsz, seq, D)
        half = self.head_dim // 2
        sign = jnp.concatenate([-jnp.ones((half,), jnp.float32),
                                jnp.ones((half,), jnp.float32)])
        cos2d = cos.reshape(bsz * q_len, self.head_dim)
        sin2d = (sin * sign).reshape(bsz * q_len, self.head_dim)

        # Projections (tiled Pallas matmuls, RoPE fused into the q/k epilogues).
        # Activations stay (bsz, seq, heads*D): no transpose(1,2) HBM round trips.
        q = pallas_linear(x2d, self.q_proj_wt, cos=cos2d, sin=sin2d,
                          head_dim=self.head_dim).reshape(bsz, q_len, -1)
        k = pallas_linear(x2d, self.k_proj_wt, cos=cos2d, sin=sin2d,
                          head_dim=self.head_dim).reshape(bsz, q_len, -1)
        v = pallas_linear(x2d, self.v_proj_wt).reshape(bsz, q_len, -1)

        # TODO(synk): arbitrary (padding / non-causal) additive masks are not plumbed
        # into the kernel; any non-None attention_mask is treated as the standard
        # causal mask (generated in-kernel), None disables masking.
        attn = pallas_flash_attention(
            q, k, v,
            num_heads=self.num_heads,
            num_kv_heads=self.num_key_value_heads,
            head_dim=self.head_dim,
            causal=attention_mask is not None,
            block_q=block_q, block_kv=block_kv)                   # (bsz, seq, H*D)

        out = pallas_linear(attn.reshape(bsz * q_len, self.num_heads * self.head_dim),
                            self.o_proj_wt)
        out = out.reshape(bsz, q_len, self.hidden_size)
        # output_attentions=False -> attn_weights None; past_key_value None
        return out, None, None


# ----------------------------------------------------------------------------
# Pure-JAX reference (mirrors the PyTorch module)
# ----------------------------------------------------------------------------
def reference_forward(mod, hidden_states, attention_mask, position_ids):
    P = jax.lax.Precision.HIGHEST
    bsz, q_len, _ = hidden_states.shape
    q = jnp.einsum("bsh,oh->bso", hidden_states, mod.q_proj_w, precision=P)
    k = jnp.einsum("bsh,oh->bso", hidden_states, mod.k_proj_w, precision=P)
    v = jnp.einsum("bsh,oh->bso", hidden_states, mod.v_proj_w, precision=P)
    q = q.reshape(bsz, q_len, mod.num_heads, mod.head_dim).transpose(0, 2, 1, 3)
    k = k.reshape(bsz, q_len, mod.num_key_value_heads, mod.head_dim).transpose(0, 2, 1, 3)
    v = v.reshape(bsz, q_len, mod.num_key_value_heads, mod.head_dim).transpose(0, 2, 1, 3)
    cos, sin = mod._rotary(position_ids)
    cos = cos[:, None]
    sin = sin[:, None]

    def rot_half(x):
        h = x.shape[-1] // 2
        return jnp.concatenate([-x[..., h:], x[..., :h]], axis=-1)

    q = q * cos + rot_half(q) * sin
    k = k * cos + rot_half(k) * sin
    n_rep = mod.num_key_value_groups
    k = jnp.repeat(k, n_rep, axis=1)
    v = jnp.repeat(v, n_rep, axis=1)
    scores = jnp.einsum("bhqd,bhkd->bhqk", q, k, precision=P) / math.sqrt(mod.head_dim)
    if attention_mask is not None:
        scores = scores + attention_mask
    w = jax.nn.softmax(scores.astype(jnp.float32), axis=-1).astype(q.dtype)
    out = jnp.einsum("bhqk,bhkd->bhqd", w, v, precision=P)
    out = out.transpose(0, 2, 1, 3).reshape(bsz, q_len, -1)
    return jnp.einsum("bsf,of->bso", out, mod.o_proj_w, precision=P)


# ----------------------------------------------------------------------------
if __name__ == "__main__":
    bsz, q_len, hidden = 2, 32, 256
    num_heads, num_kv_heads, head_dim = 4, 2, 128   # GQA with group size 2

    key = jax.random.PRNGKey(0)
    k_in, k_mod = jax.random.split(key)

    hidden_states = jax.random.normal(k_in, (bsz, q_len, hidden), dtype=jnp.float32)
    position_ids = jnp.broadcast_to(jnp.arange(q_len)[None, :], (bsz, q_len))

    # causal additive mask (bsz, 1, q_len, q_len): 0 where allowed, -1e30 otherwise
    causal = jnp.tril(jnp.ones((q_len, q_len), dtype=bool))
    attention_mask = jnp.where(causal, 0.0, NEG_INF).astype(jnp.float32)
    attention_mask = jnp.broadcast_to(attention_mask[None, None], (bsz, 1, q_len, q_len))

    mod = GemmaAttentionQKPallas(hidden, num_heads, num_kv_heads, head_dim, key=k_mod)

    # small blocks so multiple q/kv grid steps are exercised (online softmax,
    # diagonal vs full blocks, causal skip + clamped kv index_map)
    out, attn_w, past = mod(hidden_states, attention_mask, position_ids,
                            block_q=8, block_kv=8)
    out = jax.block_until_ready(out)

    ref = reference_forward(mod, hidden_states, attention_mask, position_ids)
    # bf16 MXU attention path -> slightly looser (but still tight) tolerance
    np.testing.assert_allclose(np.asarray(out), np.asarray(ref), rtol=2e-3, atol=2e-3)

    print("KERNEL_OK")
</pallas_src>

<mosaic_0001>
module attributes {stable_mosaic.version = 11 : i64} {
  func.func @kernel(%arg0: i32, %arg1: i32, %arg2: i32, %arg3: memref<64x256xf32, #tpu.memory_space<vmem>>, %arg4: memref<256x512xf32, #tpu.memory_space<vmem>>, %arg5: memref<64x128xf32, #tpu.memory_space<vmem>>, %arg6: memref<64x128xf32, #tpu.memory_space<vmem>>, %arg7: memref<64x512xf32, #tpu.memory_space<vmem>>) attributes {dimension_semantics = [#tpu.dimension_semantics<parallel>, #tpu.dimension_semantics<parallel>, #tpu.dimension_semantics<arbitrary>], iteration_bounds = array<i64: 1, 1, 1>, scalar_prefetch = 0 : i64, scratch_operands = 0 : i64, tpu.core_type = #tpu.core_type<tc>, window_params = [{transform_indices = @transform_0, window_bounds = array<i64: 64, 256>}, {transform_indices = @transform_1, window_bounds = array<i64: 256, 512>}, {transform_indices = @transform_2, window_bounds = array<i64: 64, 128>}, {transform_indices = @transform_3, window_bounds = array<i64: 64, 128>}, {transform_indices = @transform_4, window_bounds = array<i64: 64, 512>}]} {
    %c0_i32 = arith.constant 0 : i32
    %0 = arith.cmpi eq, %arg2, %c0_i32 : i32
    %1 = arith.extui %0 : i1 to i32
    %c0_i32_0 = arith.constant 0 : i32
    %2 = arith.cmpi ne, %1, %c0_i32_0 : i32
    scf.if %2 {
      %cst_10 = arith.constant 0.000000e+00 : f32
      %12 = vector.broadcast %cst_10 : f32 to vector<64x512xf32>
      %c0_11 = arith.constant 0 : index
      %c0_12 = arith.constant 0 : index
      %13 = vector.load %arg7[%c0_11, %c0_12] : memref<64x512xf32, #tpu.memory_space<vmem>>, vector<64x512xf32>
      tpu.vector_store %arg7[%c0_11, %c0_12], %12 {strides = array<i32>} : memref<64x512xf32, #tpu.memory_space<vmem>>, vector<64x512xf32>,
    } else {
    }
    %c0 = arith.constant 0 : index
    %c0_1 = arith.constant 0 : index
    %3 = vector.load %arg7[%c0, %c0_1] : memref<64x512xf32, #tpu.memory_space<vmem>>, vector<64x512xf32>
    %c0_2 = arith.constant 0 : index
    %c0_3 = arith.constant 0 : index
    %4 = vector.load %arg3[%c0_2, %c0_3] : memref<64x256xf32, #tpu.memory_space<vmem>>, vector<64x256xf32>
    %c0_4 = arith.constant 0 : index
    %c0_5 = arith.constant 0 : index
    %5 = vector.load %arg4[%c0_4, %c0_5] : memref<256x512xf32, #tpu.memory_space<vmem>>, vector<256x512xf32>
    %cst = arith.constant dense<0.000000e+00> : vector<64x512xf32>
    %6 = tpu.matmul %4, %5, %cst {dimension_numbers = #tpu.dot_dimension_numbers<[1], [0], [0], [1], [0, 0, 1, 1], [], []>} : vector<64x256xf32>, vector<256x512xf32>, vector<64x512xf32> -> vector<64x512xf32>
    %7 = arith.addf %3, %6 : vector<64x512xf32>
    %c0_6 = arith.constant 0 : index
    %c0_7 = arith.constant 0 : index
    %8 = vector.load %arg7[%c0_6, %c0_7] : memref<64x512xf32, #tpu.memory_space<vmem>>, vector<64x512xf32>
    tpu.vector_store %arg7[%c0_6, %c0_7], %7 {strides = array<i32>} : memref<64x512xf32, #tpu.memory_space<vmem>>, vector<64x512xf32>,
    %c0_i32_8 = arith.constant 0 : i32
    %9 = arith.cmpi eq, %arg2, %c0_i32_8 : i32
    %10 = arith.extui %9 : i1 to i32
    %c0_i32_9 = arith.constant 0 : i32
    %11 = arith.cmpi ne, %10, %c0_i32_9 : i32
    scf.if %11 {
      %c0_10 = arith.constant 0 : index
      %c0_11 = arith.constant 0 : index
      %12 = vector.load %arg7[%c0_10, %c0_11] : memref<64x512xf32, #tpu.memory_space<vmem>>, vector<64x512xf32>
      %c0_12 = arith.constant 0 : index
      %c0_13 = arith.constant 0 : index
      %13 = vector.load %arg5[%c0_12, %c0_13] : memref<64x128xf32, #tpu.memory_space<vmem>>, vector<64x128xf32>
      %c0_14 = arith.constant 0 : index
      %c0_15 = arith.constant 0 : index
      %14 = vector.load %arg6[%c0_14, %c0_15] : memref<64x128xf32, #tpu.memory_space<vmem>>, vector<64x128xf32>
      %15 = vector.extract_strided_slice %12 {offsets = [0, 0], sizes = [64, 128], strides = [1, 1]} : vector<64x512xf32> to vector<64x128xf32>
      %16 = arith.mulf %15, %13 : vector<64x128xf32>
      %c64_i32 = arith.constant 64 : i32
      %17 = tpu.dynamic_rotate %15 by %c64_i32 dim 1 : vector<64x128xf32>, i32 -> vector<64x128xf32>
      %18 = arith.mulf %17, %14 : vector<64x128xf32>
      %19 = arith.addf %16, %18 : vector<64x128xf32>
      %c0_16 = arith.constant 0 : index
      %c0_17 = arith.constant 0 : index
      %20 = vector.load %arg7[%c0_16, %c0_17] : memref<64x512xf32, #tpu.memory_space<vmem>>, vector<64x128xf32>
      tpu.vector_store %arg7[%c0_16, %c0_17], %19 {strides = array<i32>} : memref<64x512xf32, #tpu.memory_space<vmem>>, vector<64x128xf32>,
      %21 = vector.extract_strided_slice %12 {offsets = [0, 128], sizes = [64, 128], strides = [1, 1]} : vector<64x512xf32> to vector<64x128xf32>
      %22 = arith.mulf %21, %13 : vector<64x128xf32>
      %c64_i32_18 = arith.constant 64 : i32
      %23 = tpu.dynamic_rotate %21 by %c64_i32_18 dim 1 : vector<64x128xf32>, i32 -> vector<64x128xf32>
      %24 = arith.mulf %23, %14 : vector<64x128xf32>
      %25 = arith.addf %22, %24 : vector<64x128xf32>
      %c0_19 = arith.constant 0 : index
      %c128 = arith.constant 128 : index
      %26 = vector.load %arg7[%c0_19, %c128] : memref<64x512xf32, #tpu.memory_space<vmem>>, vector<64x128xf32>
      tpu.vector_store %arg7[%c0_19, %c128], %25 {strides = array<i32>} : memref<64x512xf32, #tpu.memory_space<vmem>>, vector<64x128xf32>,
      %27 = vector.extract_strided_slice %12 {offsets = [0, 256], sizes = [64, 128], strides = [1, 1]} : vector<64x512xf32> to vector<64x128xf32>
      %28 = arith.mulf %27, %13 : vector<64x128xf32>
      %c64_i32_20 = arith.constant 64 : i32
      %29 = tpu.dynamic_rotate %27 by %c64_i32_20 dim 1 : vector<64x128xf32>, i32 -> vector<64x128xf32>
      %30 = arith.mulf %29, %14 : vector<64x128xf32>
      %31 = arith.addf %28, %30 : vector<64x128xf32>
      %c0_21 = arith.constant 0 : index
      %c256 = arith.constant 256 : index
      %32 = vector.load %arg7[%c0_21, %c256] : memref<64x512xf32, #tpu.memory_space<vmem>>, vector<64x128xf32>
      tpu.vector_store %arg7[%c0_21, %c256], %31 {strides = array<i32>} : memref<64x512xf32, #tpu.memory_space<vmem>>, vector<64x128xf32>,
      %33 = vector.extract_strided_slice %12 {offsets = [0, 384], sizes = [64, 128], strides = [1, 1]} : vector<64x512xf32> to vector<64x128xf32>
      %34 = arith.mulf %33, %13 : vector<64x128xf32>
      %c64_i32_22 = arith.constant 64 : i32
      %35 = tpu.dynamic_rotate %33 by %c64_i32_22 dim 1 : vector<64x128xf32>, i32 -> vector<64x128xf32>
      %36 = arith.mulf %35, %14 : vector<64x128xf32>
      %37 = arith.addf %34, %36 : vector<64x128xf32>
      %c0_23 = arith.constant 0 : index
      %c384 = arith.constant 384 : index
      %38 = vector.load %arg7[%c0_23, %c384] : memref<64x512xf32, #tpu.memory_space<vmem>>, vector<64x128xf32>
      tpu.vector_store %arg7[%c0_23, %c384], %37 {strides = array<i32>} : memref<64x512xf32, #tpu.memory_space<vmem>>, vector<64x128xf32>,
    } else {
    }
    return
  }
  func.func @transform_0(%arg0: i32, %arg1: i32, %arg2: i32) -> (i32, i32) {
    %c0_i32 = arith.constant 0 : i32
    return %arg0, %arg2 : i32, i32
  }
  func.func @transform_1(%arg0: i32, %arg1: i32, %arg2: i32) -> (i32, i32) {
    %c0_i32 = arith.constant 0 : i32
    return %arg2, %arg1 : i32, i32
  }
  func.func @transform_2(%arg0: i32, %arg1: i32, %arg2: i32) -> (i32, i32) {
    %c0_i32 = arith.constant 0 : i32
    %c0_i32_0 = arith.constant 0 : i32
    return %arg0, %c0_i32 : i32, i32
  }
  func.func @transform_3(%arg0: i32, %arg1: i32, %arg2: i32) -> (i32, i32) {
    %c0_i32 = arith.constant 0 : i32
    %c0_i32_0 = arith.constant 0 : i32
    return %arg0, %c0_i32 : i32, i32
  }
  func.func @transform_4(%arg0: i32, %arg1: i32, %arg2: i32) -> (i32, i32) {
    %c0_i32 = arith.constant 0 : i32
    return %arg0, %arg1 : i32, i32
  }
}

</mosaic_0001>

<bundles_post_ra>
// kernel: tpu_custom_call.1
= control target key start
LH: loop header
LB: loop body
LE: loop exit
PB: predicated region body
PF: predicated region fallthrough
CT: control target
= control target key end

     0   :  { %9 = vsyncpa [#allocation3], 0  ;;  %s1176_s0 = inlined_call_operand.hbm [shape: f32[64,256], index: 0, kind: input, shape index: {}]   ;;  %s1177_s1 = inlined_call_operand.hbm [shape: f32[256,512], index: 1, kind: input, shape index: {}]   ;;  %s1178_s2 = inlined_call_operand.hbm [shape: f32[64,128], index: 2, kind: input, shape index: {}]   ;;  %s1179_s3 = inlined_call_operand.hbm [shape: f32[64,128], index: 3, kind: input, shape index: {}]   ;;  %s1180_s4 = inlined_call_operand.hbm [shape: f32[64,512], index: 4, kind: output, shape index: {}]  }
   0x1   :  { %10 = vsyncpa [#allocation6], 0 }
   0x2   :  { %11 = vsyncpa [#allocation9], 0 }
   0x3   :  { %12 = vsyncpa [#allocation4], 0  ;;  %s958_s15 = smov [#allocation5]  }
   0x4   :  { %s30_s16 = sshll.u32 %s958_s15, 4  ;;  %s31_s16 = int_to_ptr.vmem [resolvable:$true] %s30_s16 }
   0x5   :  { %s858_s17 = scalar_lea.vmem %s31_s16, 16384  ;;  %p863_p1 = scmp.lt.s32.totalorder %s31_s16, %s31_s16 }
   0x6   :  { %p859_p0 = scmp.ne.s32.totalorder %s31_s16, %s858_s17  ;;  %p864_p2 = scmp.lt.s32.totalorder %s858_s17, %s858_s17 }
   0x8   :  { %p865_p3 = por %p864_p2, %p863_p1 }
   0xa   :  { %p866_p4 = pnand %p865_p3, %p859_p0 }
   0xc   :  { %869 = shalt.err (!%p866_p4)
}
   0xd   :  { %s959_s18 = smov 512   ;;  %s960_s19 = smov 32  }
   0xe   :  { %36 = dma.hbm_to_vmem [thread:$0]  %s1177_s1, 16384, %s31_s16, [#allocation6], %s959_s18, %s959_s18, %s960_s19  }
   0xf   :  { %s961_s22 = smov [#allocation2]  }
  0x10   :  { %s18_s23 = sshll.u32 %s961_s22, 4  ;;  %s19_s23 = int_to_ptr.vmem [resolvable:$true] %s18_s23 }
  0x11   :  { %s878_s24 = scalar_lea.vmem %s19_s23, 2048  ;;  %p883_p6 = scmp.lt.s32.totalorder %s19_s23, %s19_s23 }
  0x12   :  { %p879_p5 = scmp.ne.s32.totalorder %s19_s23, %s878_s24  ;;  %p884_p7 = scmp.lt.s32.totalorder %s878_s24, %s878_s24 }
  0x14   :  { %p885_p8 = por %p884_p7, %p883_p6 }
  0x16   :  { %p886_p9 = pnand %p885_p8, %p879_p5 }
  0x18   :  { %889 = shalt.err (!%p886_p9)
}
  0x19   :  { %s962_s25 = smov 256   ;;  %s963_s26 = smov 16  }
  0x1a   :  { %24 = dma.hbm_to_vmem [thread:$0]  %s1176_s0, 2048, %s19_s23, [#allocation3], %s962_s25, %s962_s25, %s963_s26  }
  0x1b   :  { %s964_s29 = smov [#allocation7]  }
  0x1c   :  { %s42_s30 = sshll.u32 %s964_s29, 4  ;;  %s43_s30 = int_to_ptr.vmem [resolvable:$true] %s42_s30 }
  0x1d   :  { %s898_s1 = scalar_lea.vmem %s43_s30, 1024  ;;  %p903_p11 = scmp.lt.s32.totalorder %s43_s30, %s43_s30 }
  0x1e   :  { %p899_p10 = scmp.ne.s32.totalorder %s43_s30, %s898_s1  ;;  %p904_p12 = scmp.lt.s32.totalorder %s898_s1, %s898_s1 }
  0x20   :  { %p905_p13 = por %p904_p12, %p903_p11 }
  0x22   :  { %p906_p0 = pnand %p905_p13, %p899_p10 }
  0x24   :  { %909 = shalt.err (!%p906_p0)
}
  0x25   :  { %s965_s5 = smov 128   ;;  %s966_s6 = smov 8  }
  0x26   :  { %48 = dma.hbm_to_vmem [thread:$0]  %s1178_s2, 1024, %s43_s30, [#allocation6], %s965_s5, %s965_s5, %s966_s6  }
  0x27   :  { %s967_s9 = smov [#allocation8]  }
  0x28   :  { %s54_s10 = sshll.u32 %s967_s9, 4  ;;  %s55_s10 = int_to_ptr.vmem [resolvable:$true] %s54_s10 }
  0x29   :  { %s918_s0 = scalar_lea.vmem %s55_s10, 1024  ;;  %p923_p2 = scmp.lt.s32.totalorder %s55_s10, %s55_s10 }
  0x2a   :  { %p919_p1 = scmp.ne.s32.totalorder %s55_s10, %s918_s0  ;;  %p924_p3 = scmp.lt.s32.totalorder %s918_s0, %s918_s0 }
  0x2c   :  { %p925_p4 = por %p924_p3, %p923_p2 }
  0x2e   :  { %p926_p5 = pnand %p925_p4, %p919_p1 }
  0x30   :  { %929 = shalt.err (!%p926_p5)
}
  0x31   :  { %60 = dma.hbm_to_vmem [thread:$0]  %s1179_s3, 1024, %s55_s10, [#allocation9], %s965_s5, %s965_s5, %s966_s6  }
  0x32   :  { %950 = dma.done.wait [#allocation3], 2048  }
  0x33   :  { %951 = vsyncadd [#allocation3], 4294965248 }
  0x34   :  { %952 = dma.done.wait [#allocation6], 17408  }
  0x35   :  { %953 = vsyncadd [#allocation6], 4294949888 }
  0x36   :  { %954 = dma.done.wait [#allocation9], 1024  }
  0x37   :  { %955 = vsyncadd [#allocation9], 4294966272  ;;  %v218_v0 = vld [vmem:[#allocation5 + $0x1e8] sm:$0xff]  ;;  %v220_v1 = vld [vmem:[#allocation5 + $0x1f8] sm:$0xff]  ;;  %s968_s2 = smov 64   ;;  %s969_s3 = smov [#allocation10]  }
  0x38   :  { %v217_v2 = vld [vmem:[#allocation5 + $0x1e0] sm:$0xff]  ;;  %285 = vmatprep.subr.mxu0 %v218_v0  ;;  %398 = vmatprep.subr.mxu1 %v220_v1  ;;  %v219_v3 = vld [vmem:[#allocation5 + $0x1f0] sm:$0xff]  ;;  %v214_v4 = vld [vmem:[#allocation5 + $0x1c8] sm:$0xff]  ;;  %s823_s13 = sshll.u32 %s969_s3, 4  ;;  %s824_s13 = int_to_ptr.vmem [resolvable:$true] %s823_s13 }
  0x39   :  { %v216_v5 = vld [vmem:[#allocation5 + $0x1d8] sm:$0xff]  ;;  %286 = vmatpush1.msra.mxu0 %v217_v2  ;;  %399 = vmatpush1.msra.mxu1 %v219_v3  ;;  %v213_v6 = vld [vmem:[#allocation5 + $0x1c0] sm:$0xff]  ;;  %v215_v7 = vld [vmem:[#allocation5 + $0x1d0] sm:$0xff]  ;;  %s930_s14 = scalar_lea.vmem %s824_s13, 4096  ;;  %p935_p7 = scmp.lt.s32.totalorder %s824_s13, %s824_s13 }
  0x3a   :  { %v210_v8 = vld [vmem:[#allocation5 + $0x1a8] sm:$0xff]  ;;  %287 = vmatprep.subr.mxu0 %v214_v4  ;;  %400 = vmatprep.subr.mxu1 %v216_v5  ;;  %v212_v9 = vld [vmem:[#allocation5 + $0x1b8] sm:$0xff]  ;;  %v209_v10 = vld [vmem:[#allocation5 + $0x1a0] sm:$0xff]  ;;  %p931_p6 = scmp.ne.s32.totalorder %s824_s13, %s930_s14  ;;  %p936_p8 = scmp.lt.s32.totalorder %s930_s14, %s930_s14 }
  0x3b   :  { %v211_v11 = vld [vmem:[#allocation5 + $0x1b0] sm:$0xff]  ;;  %288 = vmatpush1.msra.mxu0 %v213_v6  ;;  %401 = vmatpush1.msra.mxu1 %v215_v7  ;;  %v206_v12 = vld [vmem:[#allocation5 + $0x188] sm:$0xff]  ;;  %v208_v13 = vld [vmem:[#allocation5 + $0x198] sm:$0xff] }
  0x3c   :  { %289 = vmatprep.subr.mxu0 %v210_v8  ;;  %402 = vmatprep.subr.mxu1 %v212_v9  ;;  %v205_v14 = vld [vmem:[#allocation5 + $0x180] sm:$0xff]  ;;  %v207_v15 = vld [vmem:[#allocation5 + $0x190] sm:$0xff]  ;;  %v202_v16 = vld [vmem:[#allocation5 + $0x168] sm:$0xff]  ;;  %p937_p9 = por %p936_p8, %p935_p7 }
  0x3d   :  { %290 = vmatpush1.msra.mxu0 %v209_v10  ;;  %403 = vmatpush1.msra.mxu1 %v211_v11  ;;  %v204_v17 = vld [vmem:[#allocation5 + $0x178] sm:$0xff]  ;;  %v201_v18 = vld [vmem:[#allocation5 + $0x160] sm:$0xff]  ;;  %v203_v19 = vld [vmem:[#allocation5 + $0x170] sm:$0xff] }
  0x3e   :  { %291 = vmatprep.subr.mxu0 %v206_v12  ;;  %404 = vmatprep.subr.mxu1 %v208_v13  ;;  %v198_v20 = vld [vmem:[#allocation5 + $0x148] sm:$0xff]  ;;  %v200_v21 = vld [vmem:[#allocation5 + $0x158] sm:$0xff]  ;;  %v197_v22 = vld [vmem:[#allocation5 + $0x140] sm:$0xff]  ;;  %p938_p10 = pnand %p937_p9, %p931_p6 }
  0x3f   :  { %292 = vmatpush1.msra.mxu0 %v205_v14  ;;  %405 = vmatpush1.msra.mxu1 %v207_v15  ;;  %v199_v23 = vld [vmem:[#allocation5 + $0x150] sm:$0xff]  ;;  %v194_v24 = vld [vmem:[#allocation5 + $0x128] sm:$0xff]  ;;  %v196_v25 = vld [vmem:[#allocation5 + $0x138] sm:$0xff] }
  0x40   :  { %293 = vmatprep.subr.mxu0 %v202_v16  ;;  %406 = vmatprep.subr.mxu1 %v204_v17  ;;  %v193_v26 = vld [vmem:[#allocation5 + $0x120] sm:$0xff]  ;;  %v195_v27 = vld [vmem:[#allocation5 + $0x130] sm:$0xff]  ;;  %v190_v28 = vld [vmem:[#allocation5 + $0x108] sm:$0xff] }
  0x41   :  { %294 = vmatpush1.msra.mxu0 %v201_v18  ;;  %407 = vmatpush1.msra.mxu1 %v203_v19  ;;  %v192_v29 = vld [vmem:[#allocation5 + $0x118] sm:$0xff]  ;;  %v189_v30 = vld [vmem:[#allocation5 + $0x100] sm:$0xff]  ;;  %v191_v31 = vld [vmem:[#allocation5 + $0x110] sm:$0xff] }
  0x42   :  { %295 = vmatprep.subr.mxu0 %v198_v20  ;;  %408 = vmatprep.subr.mxu1 %v200_v21  ;;  %v186_v32 = vld [vmem:[#allocation5 + $0xe8] sm:$0xff]  ;;  %v188_v33 = vld [vmem:[#allocation5 + $0xf8] sm:$0xff]  ;;  %v185_v34 = vld [vmem:[#allocation5 + $0xe0] sm:$0xff] }
  0x43   :  { %296 = vmatpush1.msra.mxu0 %v197_v22  ;;  %409 = vmatpush1.msra.mxu1 %v199_v23  ;;  %v187_v35 = vld [vmem:[#allocation5 + $0xf0] sm:$0xff]  ;;  %v182_v36 = vld [vmem:[#allocation5 + $0xc8] sm:$0xff]  ;;  %v184_v37 = vld [vmem:[#allocation5 + $0xd8] sm:$0xff] }
  0x44   :  { %297 = vmatprep.subr.mxu0 %v194_v24  ;;  %410 = vmatprep.subr.mxu1 %v196_v25  ;;  %v181_v38 = vld [vmem:[#allocation5 + $0xc0] sm:$0xff]  ;;  %v183_v39 = vld [vmem:[#allocation5 + $0xd0] sm:$0xff]  ;;  %v178_v40 = vld [vmem:[#allocation5 + $0xa8] sm:$0xff] }
  0x45   :  { %298 = vmatpush1.msra.mxu0 %v193_v26  ;;  %411 = vmatpush1.msra.mxu1 %v195_v27  ;;  %v180_v41 = vld [vmem:[#allocation5 + $0xb8] sm:$0xff]  ;;  %v177_v42 = vld [vmem:[#allocation5 + $0xa0] sm:$0xff]  ;;  %v179_v43 = vld [vmem:[#allocation5 + $0xb0] sm:$0xff] }
  0x46   :  { %299 = vmatprep.subr.mxu0 %v190_v28  ;;  %412 = vmatprep.subr.mxu1 %v192_v29  ;;  %v174_v44 = vld [vmem:[#allocation5 + $0x88] sm:$0xff]  ;;  %v176_v45 = vld [vmem:[#allocation5 + $0x98] sm:$0xff]  ;;  %v173_v46 = vld [vmem:[#allocation5 + $0x80] sm:$0xff] }
  0x47   :  { %300 = vmatpush1.msra.mxu0 %v189_v30  ;;  %413 = vmatpush1.msra.mxu1 %v191_v31  ;;  %v175_v47 = vld [vmem:[#allocation5 + $0x90] sm:$0xff]  ;;  %v170_v48 = vld [vmem:[#allocation5 + $0x68] sm:$0xff]  ;;  %v172_v49 = vld [vmem:[#allocation5 + $0x78] sm:$0xff] }
  0x48   :  { %301 = vmatprep.subr.mxu0 %v186_v32  ;;  %414 = vmatprep.subr.mxu1 %v188_v33  ;;  %v169_v50 = vld [vmem:[#allocation5 + $0x60] sm:$0xff]  ;;  %v171_v51 = vld [vmem:[#allocation5 + $0x70] sm:$0xff]  ;;  %v166_v52 = vld [vmem:[#allocation5 + $0x48] sm:$0xff] }
  0x49   :  { %302 = vmatpush1.msra.mxu0 %v185_v34  ;;  %415 = vmatpush1.msra.mxu1 %v187_v35  ;;  %v168_v53 = vld [vmem:[#allocation5 + $0x58] sm:$0xff]  ;;  %v165_v54 = vld [vmem:[#allocation5 + $0x40] sm:$0xff]  ;;  %v167_v55 = vld [vmem:[#allocation5 + $0x50] sm:$0xff] }
  0x4a   :  { %303 = vmatprep.subr.mxu0 %v182_v36  ;;  %416 = vmatprep.subr.mxu1 %v184_v37  ;;  %v162_v56 = vld [vmem:[#allocation5 + $0x28] sm:$0xff]  ;;  %v164_v57 = vld [vmem:[#allocation5 + $0x38] sm:$0xff]  ;;  %v161_v58 = vld [vmem:[#allocation5 + $0x20] sm:$0xff] }
  0x4b   :  { %304 = vmatpush1.msra.mxu0 %v181_v38  ;;  %417 = vmatpush1.msra.mxu1 %v183_v39  ;;  %v163_v59 = vld [vmem:[#allocation5 + $0x30] sm:$0xff]  ;;  %v158_v60 = vld [vmem:[#allocation5 + $0x8] sm:$0xff]  ;;  %v160_v61 = vld [vmem:[#allocation5 + $0x18] sm:$0xff] }
  0x4c   :  { %305 = vmatprep.subr.mxu0 %v178_v40  ;;  %418 = vmatprep.subr.mxu1 %v180_v41  ;;  %v157_v62 = vld [vmem:[#allocation5] sm:$0xff]  ;;  %v159_v63 = vld [vmem:[#allocation5 + $0x10] sm:$0xff]  ;;  %v282_v0 = vld [vmem:[#allocation5 + $0x3e8] sm:$0xff] }
  0x4d   :  { %306 = vmatpush1.msra.mxu0 %v177_v42  ;;  %419 = vmatpush1.msra.mxu1 %v179_v43  ;;  %v284_v1 = vld [vmem:[#allocation5 + $0x3f8] sm:$0xff]  ;;  %v281_v2 = vld [vmem:[#allocation5 + $0x3e0] sm:$0xff]  ;;  %v283_v3 = vld [vmem:[#allocation5 + $0x3f0] sm:$0xff] }
  0x4e   :  { %307 = vmatprep.subr.mxu0 %v174_v44  ;;  %420 = vmatprep.subr.mxu1 %v176_v45  ;;  %v278_v4 = vld [vmem:[#allocation5 + $0x3c8] sm:$0xff]  ;;  %v280_v5 = vld [vmem:[#allocation5 + $0x3d8] sm:$0xff]  ;;  %v277_v6 = vld [vmem:[#allocation5 + $0x3c0] sm:$0xff] }
  0x4f   :  { %308 = vmatpush1.msra.mxu0 %v173_v46  ;;  %421 = vmatpush1.msra.mxu1 %v175_v47  ;;  %v279_v7 = vld [vmem:[#allocation5 + $0x3d0] sm:$0xff]  ;;  %v274_v8 = vld [vmem:[#allocation5 + $0x3a8] sm:$0xff]  ;;  %v276_v9 = vld [vmem:[#allocation5 + $0x3b8] sm:$0xff] }
  0x50   :  { %309 = vmatprep.subr.mxu0 %v170_v48  ;;  %422 = vmatprep.subr.mxu1 %v172_v49  ;;  %v273_v10 = vld [vmem:[#allocation5 + $0x3a0] sm:$0xff]  ;;  %v275_v11 = vld [vmem:[#allocation5 + $0x3b0] sm:$0xff]  ;;  %v270_v12 = vld [vmem:[#allocation5 + $0x388] sm:$0xff] }
  0x51   :  { %310 = vmatpush1.msra.mxu0 %v169_v50  ;;  %423 = vmatpush1.msra.mxu1 %v171_v51  ;;  %v272_v13 = vld [vmem:[#allocation5 + $0x398] sm:$0xff]  ;;  %v269_v14 = vld [vmem:[#allocation5 + $0x380] sm:$0xff]  ;;  %v271_v15 = vld [vmem:[#allocation5 + $0x390] sm:$0xff] }
  0x52   :  { %311 = vmatprep.subr.mxu0 %v166_v52  ;;  %424 = vmatprep.subr.mxu1 %v168_v53  ;;  %v266_v16 = vld [vmem:[#allocation5 + $0x368] sm:$0xff]  ;;  %v268_v17 = vld [vmem:[#allocation5 + $0x378] sm:$0xff]  ;;  %v265_v18 = vld [vmem:[#allocation5 + $0x360] sm:$0xff] }
  0x53   :  { %312 = vmatpush1.msra.mxu0 %v165_v54  ;;  %425 = vmatpush1.msra.mxu1 %v167_v55  ;;  %v267_v19 = vld [vmem:[#allocation5 + $0x370] sm:$0xff]  ;;  %v262_v20 = vld [vmem:[#allocation5 + $0x348] sm:$0xff]  ;;  %v264_v21 = vld [vmem:[#allocation5 + $0x358] sm:$0xff] }
  0x54   :  { %313 = vmatprep.subr.mxu0 %v162_v56  ;;  %426 = vmatprep.subr.mxu1 %v164_v57  ;;  %v261_v22 = vld [vmem:[#allocation5 + $0x340] sm:$0xff]  ;;  %v263_v23 = vld [vmem:[#allocation5 + $0x350] sm:$0xff]  ;;  %v258_v24 = vld [vmem:[#allocation5 + $0x328] sm:$0xff] }
  0x55   :  { %314 = vmatpush1.msra.mxu0 %v161_v58  ;;  %427 = vmatpush1.msra.mxu1 %v163_v59  ;;  %v260_v25 = vld [vmem:[#allocation5 + $0x338] sm:$0xff]  ;;  %v257_v26 = vld [vmem:[#allocation5 + $0x320] sm:$0xff]  ;;  %v259_v27 = vld [vmem:[#allocation5 + $0x330] sm:$0xff] }
  0x56   :  { %315 = vmatprep.subr.mxu0 %v158_v60  ;;  %428 = vmatprep.subr.mxu1 %v160_v61  ;;  %v254_v28 = vld [vmem:[#allocation5 + $0x308] sm:$0xff]  ;;  %v256_v29 = vld [vmem:[#allocation5 + $0x318] sm:$0xff]  ;;  %v253_v30 = vld [vmem:[#allocation5 + $0x300] sm:$0xff] }
  0x57   :  { %316 = vmatpush1.msra.mxu0 %v157_v62  ;;  %429 = vmatpush1.msra.mxu1 %v159_v63  ;;  %v255_v31 = vld [vmem:[#allocation5 + $0x310] sm:$0xff]  ;;  %v250_v32 = vld [vmem:[#allocation5 + $0x2e8] sm:$0xff]  ;;  %v252_v33 = vld [vmem:[#allocation5 + $0x2f8] sm:$0xff] }
  0x58   :  { %317 = vmatprep.subr.mxu0 %v282_v0  ;;  %430 = vmatprep.subr.mxu1 %v284_v1  ;;  %v249_v34 = vld [vmem:[#allocation5 + $0x2e0] sm:$0xff]  ;;  %v251_v35 = vld [vmem:[#allocation5 + $0x2f0] sm:$0xff]  ;;  %v246_v36 = vld [vmem:[#allocation5 + $0x2c8] sm:$0xff] }
  0x59   :  { %318 = vmatpush2.msra.mxu0 %v281_v2  ;;  %431 = vmatpush2.msra.mxu1 %v283_v3  ;;  %v248_v37 = vld [vmem:[#allocation5 + $0x2d8] sm:$0xff]  ;;  %v245_v38 = vld [vmem:[#allocation5 + $0x2c0] sm:$0xff]  ;;  %v247_v39 = vld [vmem:[#allocation5 + $0x2d0] sm:$0xff] }
  0x5a   :  { %319 = vmatprep.subr.mxu0 %v278_v4  ;;  %432 = vmatprep.subr.mxu1 %v280_v5  ;;  %v242_v40 = vld [vmem:[#allocation5 + $0x2a8] sm:$0xff]  ;;  %v244_v41 = vld [vmem:[#allocation5 + $0x2b8] sm:$0xff]  ;;  %v241_v42 = vld [vmem:[#allocation5 + $0x2a0] sm:$0xff] }
  0x5b   :  { %320 = vmatpush2.msra.mxu0 %v277_v6  ;;  %433 = vmatpush2.msra.mxu1 %v279_v7  ;;  %v243_v43 = vld [vmem:[#allocation5 + $0x2b0] sm:$0xff]  ;;  %v238_v44 = vld [vmem:[#allocation5 + $0x288] sm:$0xff]  ;;  %v240_v45 = vld [vmem:[#allocation5 + $0x298] sm:$0xff] }
  0x5c   :  { %321 = vmatprep.subr.mxu0 %v274_v8  ;;  %434 = vmatprep.subr.mxu1 %v276_v9  ;;  %v237_v46 = vld [vmem:[#allocation5 + $0x280] sm:$0xff]  ;;  %v239_v47 = vld [vmem:[#allocation5 + $0x290] sm:$0xff]  ;;  %v234_v48 = vld [vmem:[#allocation5 + $0x268] sm:$0xff] }
  0x5d   :  { %322 = vmatpush2.msra.mxu0 %v273_v10  ;;  %435 = vmatpush2.msra.mxu1 %v275_v11  ;;  %v236_v49 = vld [vmem:[#allocation5 + $0x278] sm:$0xff]  ;;  %v233_v50 = vld [vmem:[#allocation5 + $0x260] sm:$0xff]  ;;  %v235_v51 = vld [vmem:[#allocation5 + $0x270] sm:$0xff] }
  0x5e   :  { %323 = vmatprep.subr.mxu0 %v270_v12  ;;  %436 = vmatprep.subr.mxu1 %v272_v13  ;;  %v230_v52 = vld [vmem:[#allocation5 + $0x248] sm:$0xff]  ;;  %v232_v53 = vld [vmem:[#allocation5 + $0x258] sm:$0xff]  ;;  %v229_v54 = vld [vmem:[#allocation5 + $0x240] sm:$0xff] }
  0x5f   :  { %324 = vmatpush2.msra.mxu0 %v269_v14  ;;  %437 = vmatpush2.msra.mxu1 %v271_v15  ;;  %v231_v55 = vld [vmem:[#allocation5 + $0x250] sm:$0xff]  ;;  %v226_v56 = vld [vmem:[#allocation5 + $0x228] sm:$0xff]  ;;  %v228_v57 = vld [vmem:[#allocation5 + $0x238] sm:$0xff] }
  0x60   :  { %325 = vmatprep.subr.mxu0 %v266_v16  ;;  %438 = vmatprep.subr.mxu1 %v268_v17  ;;  %v225_v58 = vld [vmem:[#allocation5 + $0x220] sm:$0xff]  ;;  %v227_v59 = vld [vmem:[#allocation5 + $0x230] sm:$0xff]  ;;  %v222_v60 = vld [vmem:[#allocation5 + $0x208] sm:$0xff] }
  0x61   :  { %326 = vmatpush2.msra.mxu0 %v265_v18  ;;  %439 = vmatpush2.msra.mxu1 %v267_v19  ;;  %v224_v61 = vld [vmem:[#allocation5 + $0x218] sm:$0xff]  ;;  %v221_v62 = vld [vmem:[#allocation5 + $0x200] sm:$0xff]  ;;  %v142_v63 = vld [vmem:[#allocation2 + $0x8] sm:$0xff] }
  0x62   :  { %327 = vmatprep.subr.mxu0 %v262_v20  ;;  %440 = vmatprep.subr.mxu1 %v264_v21  ;;  %v223_v0 = vld [vmem:[#allocation5 + $0x210] sm:$0xff]  ;;  %v141_v1 = vld [vmem:[#allocation2] sm:$0xff]  ;;  %v144_v2 = vld [vmem:[#allocation2 + $0x18] sm:$0xff] }
  0x63   :  { %328 = vmatpush2.msra.mxu0 %v261_v22  ;;  %441 = vmatpush2.msra.mxu1 %v263_v23  ;;  %v143_v3 = vld [vmem:[#allocation2 + $0x10] sm:$0xff]  ;;  %v146_v4 = vld [vmem:[#allocation2 + $0x28] sm:$0xff]  ;;  %v145_v5 = vld [vmem:[#allocation2 + $0x20] sm:$0xff] }
  0x64   :  { %329 = vmatprep.subr.mxu0 %v258_v24  ;;  %442 = vmatprep.subr.mxu1 %v260_v25  ;;  %v148_v6 = vld [vmem:[#allocation2 + $0x38] sm:$0xff]  ;;  %v147_v7 = vld [vmem:[#allocation2 + $0x30] sm:$0xff]  ;;  %v150_v8 = vld [vmem:[#allocation2 + $0x48] sm:$0xff] }
  0x65   :  { %330 = vmatpush2.msra.mxu0 %v257_v26  ;;  %443 = vmatpush2.msra.mxu1 %v259_v27  ;;  %v149_v9 = vld [vmem:[#allocation2 + $0x40] sm:$0xff]  ;;  %v152_v10 = vld [vmem:[#allocation2 + $0x58] sm:$0xff]  ;;  %v151_v11 = vld [vmem:[#allocation2 + $0x50] sm:$0xff] }
  0x66   :  { %331 = vmatprep.subr.mxu0 %v254_v28  ;;  %444 = vmatprep.subr.mxu1 %v256_v29  ;;  %v154_v12 = vld [vmem:[#allocation2 + $0x68] sm:$0xff]  ;;  %v153_v13 = vld [vmem:[#allocation2 + $0x60] sm:$0xff]  ;;  %v156_v14 = vld [vmem:[#allocation2 + $0x78] sm:$0xff] }
  0x67   :  { %332 = vmatpush2.msra.mxu0 %v253_v30  ;;  %445 = vmatpush2.msra.mxu1 %v255_v31  ;;  %v155_v15 = vld [vmem:[#allocation2 + $0x70] sm:$0xff] }
  0x68   :  { %333 = vmatprep.subr.mxu0 %v250_v32  ;;  %446 = vmatprep.subr.mxu1 %v252_v33 }
  0x69   :  { %334 = vmatpush2.msra.mxu0 %v249_v34  ;;  %447 = vmatpush2.msra.mxu1 %v251_v35 }
  0x6a   :  { %335 = vmatprep.subr.mxu0 %v246_v36  ;;  %448 = vmatprep.subr.mxu1 %v248_v37 }
  0x6b   :  { %336 = vmatpush2.msra.mxu0 %v245_v38  ;;  %449 = vmatpush2.msra.mxu1 %v247_v39 }
  0x6c   :  { %337 = vmatprep.subr.mxu0 %v242_v40  ;;  %450 = vmatprep.subr.mxu1 %v244_v41 }
  0x6d   :  { %338 = vmatpush2.msra.mxu0 %v241_v42  ;;  %451 = vmatpush2.msra.mxu1 %v243_v43 }
  0x6e   :  { %339 = vmatprep.subr.mxu0 %v238_v44  ;;  %452 = vmatprep.subr.mxu1 %v240_v45 }
  0x6f   :  { %340 = vmatpush2.msra.mxu0 %v237_v46  ;;  %453 = vmatpush2.msra.mxu1 %v239_v47 }
  0x70   :  { %341 = vmatprep.subr.mxu0 %v234_v48  ;;  %454 = vmatprep.subr.mxu1 %v236_v49  ;;  %v618_v48 = vld [vmem:[#allocation8] sm:$0xff] }
  0x71   :  { %342 = vmatpush2.msra.mxu0 %v233_v50  ;;  %455 = vmatpush2.msra.mxu1 %v235_v51  ;;  %v610_v49 = vld [vmem:[#allocation7] sm:$0xff] }
  0x72   :  { %343 = vmatprep.subr.mxu0 %v230_v52  ;;  %456 = vmatprep.subr.mxu1 %v232_v53  ;;  %v611_v53 = vld [vmem:[#allocation7 + $0x8] sm:$0xff] }
  0x73   :  { %344 = vmatpush2.msra.mxu0 %v229_v54  ;;  %457 = vmatpush2.msra.mxu1 %v231_v55  ;;  %v619_v54 = vld [vmem:[#allocation8 + $0x8] sm:$0xff] }
  0x74   :  { %345 = vmatprep.subr.mxu0 %v226_v56  ;;  %458 = vmatprep.subr.mxu1 %v228_v57 }
  0x75   :  { %346 = vmatpush2.msra.mxu0 %v225_v58  ;;  %459 = vmatpush2.msra.mxu1 %v227_v59 }
  0x76   :  { %347 = vmatprep.subr.mxu0 %v222_v60  ;;  %460 = vmatprep.subr.mxu1 %v224_v61 }
  0x77   :  { %348 = vmatpush2.msra.mxu0 %v221_v62  ;;  %349 = vmatprep.mubr.f32.mxu0 %v142_v63 }
  0x78   :  { %461 = vmatpush2.msra.mxu1 %v223_v0  ;;  %462 = vmatprep.mubr.f32.mxu1 %v142_v63 }
  0x79   :  { %350 = vmatmul.mubr.f32.vlgmr.msra.gmra.mxu0 %v141_v1  ;;  %463 = vmatmul.mubr.f32.vlgmr.msra.gmra.mxu1 %v141_v1 }
  0x7a   :  { %355 = vmatprep.mubr.f32.mxu0 %v144_v2  ;;  %468 = vmatprep.mubr.f32.mxu1 %v144_v2 }
  0x7d   :  { %356 = vmatmul.mubr.f32.gmra.mxu0 %v143_v3  ;;  %469 = vmatmul.mubr.f32.gmra.mxu1 %v143_v3 }
  0x7e   :  { %361 = vmatprep.mubr.f32.mxu0 %v146_v4  ;;  %474 = vmatprep.mubr.f32.mxu1 %v146_v4 }
  0x81   :  { %362 = vmatmul.mubr.f32.gmra.mxu0 %v145_v5  ;;  %475 = vmatmul.mubr.f32.gmra.mxu1 %v145_v5 }
  0x82   :  { %367 = vmatprep.mubr.f32.mxu0 %v148_v6  ;;  %480 = vmatprep.mubr.f32.mxu1 %v148_v6 }
  0x85   :  { %368 = vmatmul.mubr.f32.gmra.mxu0 %v147_v7  ;;  %481 = vmatmul.mubr.f32.gmra.mxu1 %v147_v7 }
  0x86   :  { %373 = vmatprep.mubr.f32.mxu0 %v150_v8  ;;  %486 = vmatprep.mubr.f32.mxu1 %v150_v8 }
  0x89   :  { %374 = vmatmul.mubr.f32.gmra.mxu0 %v149_v9  ;;  %487 = vmatmul.mubr.f32.gmra.mxu1 %v149_v9 }
  0x8a   :  { %379 = vmatprep.mubr.f32.mxu0 %v152_v10  ;;  %492 = vmatprep.mubr.f32.mxu1 %v152_v10 }
  0x8d   :  { %380 = vmatmul.mubr.f32.gmra.mxu0 %v151_v11  ;;  %493 = vmatmul.mubr.f32.gmra.mxu1 %v151_v11 }
  0x8e   :  { %385 = vmatprep.mubr.f32.mxu0 %v154_v12  ;;  %498 = vmatprep.mubr.f32.mxu1 %v154_v12 }
  0x91   :  { %386 = vmatmul.mubr.f32.gmra.mxu0 %v153_v13  ;;  %499 = vmatmul.mubr.f32.gmra.mxu1 %v153_v13 }
  0x92   :  { %391 = vmatprep.mubr.f32.mxu0 %v156_v14  ;;  %504 = vmatprep.mubr.f32.mxu1 %v156_v14  ;;  %v612_v14 = vld [vmem:[#allocation7 + $0x10] sm:$0xff] }
  0x95   :  { %392 = vmatmul.mubr.f32.gmra.mxu0 %v155_v15  ;;  %505 = vmatmul.mubr.f32.gmra.mxu1 %v155_v15  ;;  %v620_v15 = vld [vmem:[#allocation8 + $0x10] sm:$0xff] }
 0x139   :  { %v1010_v16 = vpop.f32.mrf.mxu0  ;;  %v1012_v17 = vpop.f32.mrf.mxu1 }
 0x13a   :  { %634 = vrot.lane.b32.xlu0 %v1010_v16, %s968_s2  ;;  %v626_v51 = vmul.f32 %v610_v49, %v1010_v16  ;;  %v722_v59 = vmul.f32 %v610_v49, %v1012_v17 }
 0x13b   :  { %v1014_v18 = vpop.f32.mrf.mxu0  ;;  %v1016_v19 = vpop.f32.mrf.mxu1 }
 0x13c   :  { %v674_v3 = vmul.f32 %v610_v49, %v1014_v18  ;;  %v770_v11 = vmul.f32 %v610_v49, %v1016_v19 }
 0x13d   :  { %v1020_v20 = vpop.f32.mrf.mxu0  ;;  %v1022_v21 = vpop.f32.mrf.mxu1 }
 0x13e   :  { %732 = vrot.lane.b32.xlu1 %v1022_v21, %s968_s2  ;;  %730 = vrot.lane.b32.xlu0 %v1012_v17, %s968_s2  ;;  %v723_v58 = vmul.f32 %v611_v53, %v1022_v21 }
 0x13f   :  { %v1024_v22 = vpop.f32.mrf.mxu0  ;;  %v1030_v23 = vpop.f32.mrf.mxu1 }
 0x140   :  { %v675_v2 = vmul.f32 %v611_v53, %v1024_v22  ;;  %v771_v10 = vmul.f32 %v611_v53, %v1030_v23 }
 0x141   :  { %v1032_v24 = vpop.f32.mrf.mxu0  ;;  %v1040_v26 = vpop.f32.mrf.mxu1 }
 0x142   :  { %684 = vrot.lane.b32.xlu1 %v1024_v22, %s968_s2  ;;  %682 = vrot.lane.b32.xlu0 %v1014_v18, %s968_s2  ;;  %v628_v22 = vmul.f32 %v612_v14, %v1032_v24 }
 0x143   :  { %v1038_v25 = vpop.f32.mrf.mxu0  ;;  %v1048_v28 = vpop.f32.mrf.mxu1 }
 0x145   :  { %v1046_v27 = vpop.f32.mrf.mxu0  ;;  %v1054_v29 = vpop.f32.mrf.mxu1 }
 0x146   :  { %780 = vrot.lane.b32.xlu1 %v1030_v23, %s968_s2  ;;  %778 = vrot.lane.b32.xlu0 %v1016_v19, %s968_s2  ;;  %v621_v19 = vld [vmem:[#allocation8 + $0x18] sm:$0xff] }
 0x147   :  { %v1060_v30 = vpop.f32.mrf.mxu0  ;;  %v1068_v32 = vpop.f32.mrf.mxu1 }
 0x149   :  { %v1062_v31 = vpop.f32.mrf.mxu0  ;;  %v1072_v34 = vpop.f32.mrf.mxu1 }
 0x14a   :  { %638 = vrot.lane.b32.xlu1 %v1032_v24, %s968_s2  ;;  %636 = vrot.lane.b32.xlu0 %v1020_v20, %s968_s2 }
 0x14b   :  { %v1070_v33 = vpop.f32.mrf.mxu0  ;;  %v1080_v36 = vpop.f32.mrf.mxu1 }
 0x14d   :  { %v1078_v35 = vpop.f32.mrf.mxu0  ;;  %v1086_v37 = vpop.f32.mrf.mxu1 }
 0x14e   :  { %640 = vrot.lane.b32.xlu1 %v1046_v27, %s968_s2  ;;  %734 = vrot.lane.b32.xlu0 %v1040_v26, %s968_s2 }
 0x14f   :  { %v1092_v38 = vpop.f32.mrf.mxu0  ;;  %v1100_v40 = vpop.f32.mrf.mxu1 }
 0x151   :  { %v1094_v39 = vpop.f32.mrf.mxu0  ;;  %v1104_v42 = vpop.f32.mrf.mxu1 }
 0x152   :  { %736 = vrot.lane.b32.xlu1 %v1054_v29, %s968_s2  ;;  %686 = vrot.lane.b32.xlu0 %v1038_v25, %s968_s2 }
 0x153   :  { %v1102_v41 = vpop.f32.mrf.mxu0  ;;  %v1112_v44 = vpop.f32.mrf.mxu1 }
 0x155   :  { %v1110_v43 = vpop.f32.mrf.mxu0  ;;  %v1118_v45 = vpop.f32.mrf.mxu1 }
 0x156   :  { %688 = vrot.lane.b32.xlu1 %v1060_v30, %s968_s2  ;;  %782 = vrot.lane.b32.xlu0 %v1048_v28, %s968_s2 }
 0x157   :  { %v1124_v46 = vpop.f32.mrf.mxu0  ;;  %v1130_v47 = vpop.f32.mrf.mxu1 }
 0x15a   :  { %784 = vrot.lane.b32.xlu1 %v1068_v32, %s968_s2  ;;  %642 = vrot.lane.b32.xlu0 %v1062_v31, %s968_s2 }
 0x15e   :  { %644 = vrot.lane.b32.xlu1 %v1078_v35, %s968_s2  ;;  %738 = vrot.lane.b32.xlu0 %v1072_v34, %s968_s2 }
 0x162   :  { %740 = vrot.lane.b32.xlu1 %v1086_v37, %s968_s2  ;;  %690 = vrot.lane.b32.xlu0 %v1070_v33, %s968_s2 }
 0x166   :  { %692 = vrot.lane.b32.xlu1 %v1092_v38, %s968_s2  ;;  %786 = vrot.lane.b32.xlu0 %v1080_v36, %s968_s2 }
 0x16a   :  { %788 = vrot.lane.b32.xlu1 %v1100_v40, %s968_s2  ;;  %646 = vrot.lane.b32.xlu0 %v1094_v39, %s968_s2 }
 0x16e   :  { %648 = vrot.lane.b32.xlu1 %v1110_v43, %s968_s2  ;;  %742 = vrot.lane.b32.xlu0 %v1104_v42, %s968_s2 }
 0x172   :  { %744 = vrot.lane.b32.xlu1 %v1118_v45, %s968_s2  ;;  %694 = vrot.lane.b32.xlu0 %v1102_v41, %s968_s2 }
 0x176   :  { %696 = vrot.lane.b32.xlu1 %v1124_v46, %s968_s2  ;;  %790 = vrot.lane.b32.xlu0 %v1112_v44, %s968_s2 }
 0x17a   :  { %792 = vrot.lane.b32.xlu1 %v1130_v47, %s968_s2 }
 0x1ac   :  { %v635_v50 = vpop.permute.xlu0 %634 }
 0x1ad   :  { %v650_v52 = vmul.f32 %v635_v50, %v618_v48  ;;  %v627_v50 = vmul.f32 %v611_v53, %v1020_v20 }
 0x1af   :  { %v658_v55 = vadd.f32 %v650_v52, %v626_v51  ;;  %v613_v52 = vld [vmem:[#allocation7 + $0x18] sm:$0xff] }
 0x1b0   :  { %v733_v56 = vpop.permute.xlu1 %732  ;;  %v731_v57 = vpop.permute.xlu0 %730 }
 0x1b1   :  { %666 = vst [vmem:[#allocation10] sm:$0xff] %v658_v55  ;;  %v747_v60 = vmul.f32 %v733_v56, %v619_v54  ;;  %v746_v61 = vmul.f32 %v731_v57, %v618_v48  ;;  %v629_v57 = vmul.f32 %v613_v52, %v1046_v27 }
 0x1b3   :  { %v755_v62 = vadd.f32 %v747_v60, %v723_v58  ;;  %v754_v63 = vadd.f32 %v746_v61, %v722_v59  ;;  %v724_v58 = vmul.f32 %v612_v14, %v1040_v26 }
 0x1b4   :  { %v685_v0 = vpop.permute.xlu1 %684  ;;  %v683_v1 = vpop.permute.xlu0 %682 }
 0x1b5   :  { %763 = vst [vmem:[#allocation10 + $0x30] sm:$0xff] %v755_v62  ;;  %762 = vst [vmem:[#allocation10 + $0x10] sm:$0xff] %v754_v63  ;;  %v699_v4 = vmul.f32 %v685_v0, %v619_v54  ;;  %v698_v5 = vmul.f32 %v683_v1, %v618_v48  ;;  %v676_v62 = vmul.f32 %v612_v14, %v1038_v25 }
 0x1b7   :  { %v707_v6 = vadd.f32 %v699_v4, %v675_v2  ;;  %v706_v7 = vadd.f32 %v698_v5, %v674_v3  ;;  %v677_v3 = vmul.f32 %v613_v52, %v1060_v30  ;;  %v772_v4 = vmul.f32 %v612_v14, %v1048_v28  ;;  %v623_v28 = vld [vmem:[#allocation8 + $0x28] sm:$0xff] }
 0x1b8   :  { %v781_v8 = vpop.permute.xlu1 %780  ;;  %v779_v9 = vpop.permute.xlu0 %778 }
 0x1b9   :  { %715 = vst [vmem:[#allocation10 + $0x28] sm:$0xff] %v707_v6  ;;  %714 = vst [vmem:[#allocation10 + $0x8] sm:$0xff] %v706_v7  ;;  %v795_v12 = vmul.f32 %v781_v8, %v619_v54  ;;  %v794_v13 = vmul.f32 %v779_v9, %v618_v48  ;;  %v614_v7 = vld [vmem:[#allocation7 + $0x20] sm:$0xff] }
 0x1bb   :  { %v803_v16 = vadd.f32 %v795_v12, %v771_v10  ;;  %v802_v17 = vadd.f32 %v794_v13, %v770_v11  ;;  %v773_v11 = vmul.f32 %v613_v52, %v1068_v32  ;;  %v630_v12 = vmul.f32 %v614_v7, %v1062_v31 }
 0x1bc   :  { %v639_v18 = vpop.permute.xlu1 %638  ;;  %v637_v21 = vpop.permute.xlu0 %636 }
 0x1bd   :  { %811 = vst [vmem:[#allocation10 + $0x38] sm:$0xff] %v803_v16  ;;  %810 = vst [vmem:[#allocation10 + $0x18] sm:$0xff] %v802_v17  ;;  %v652_v51 = vmul.f32 %v639_v18, %v620_v15  ;;  %v651_v23 = vmul.f32 %v637_v21, %v619_v54  ;;  %v725_v54 = vmul.f32 %v613_v52, %v1054_v29  ;;  %v622_v29 = vld [vmem:[#allocation8 + $0x20] sm:$0xff]  ;;  %v615_v16 = vld [vmem:[#allocation7 + $0x28] sm:$0xff] }
 0x1be   :  { %v631_v21 = vmul.f32 %v615_v16, %v1078_v35 }
 0x1bf   :  { %v660_v49 = vadd.f32 %v652_v51, %v628_v22  ;;  %v659_v55 = vadd.f32 %v651_v23, %v627_v50  ;;  %v726_v22 = vmul.f32 %v614_v7, %v1072_v34 }
 0x1c0   :  { %v641_v56 = vpop.permute.xlu1 %640  ;;  %v735_v48 = vpop.permute.xlu0 %734 }
 0x1c1   :  { %668 = vst [vmem:[#allocation10 + $0x40] sm:$0xff] %v660_v49  ;;  %667 = vst [vmem:[#allocation10 + $0x20] sm:$0xff] %v659_v55  ;;  %v653_v59 = vmul.f32 %v641_v56, %v621_v19  ;;  %v748_v24 = vmul.f32 %v735_v48, %v620_v15  ;;  %v678_v49 = vmul.f32 %v614_v7, %v1070_v33 }
 0x1c3   :  { %v661_v60 = vadd.f32 %v653_v59, %v629_v57  ;;  %v756_v20 = vadd.f32 %v748_v24, %v724_v58  ;;  %v679_v58 = vmul.f32 %v615_v16, %v1092_v38  ;;  %v774_v59 = vmul.f32 %v614_v7, %v1080_v36  ;;  %v625_v36 = vld [vmem:[#allocation8 + $0x38] sm:$0xff] }
 0x1c4   :  { %v737_v53 = vpop.permute.xlu1 %736  ;;  %v687_v61 = vpop.permute.xlu0 %686 }
 0x1c5   :  { %669 = vst [vmem:[#allocation10 + $0x60] sm:$0xff] %v661_v60  ;;  %764 = vst [vmem:[#allocation10 + $0x50] sm:$0xff] %v756_v20  ;;  %v749_v63 = vmul.f32 %v737_v53, %v621_v19  ;;  %v700_v0 = vmul.f32 %v687_v61, %v620_v15  ;;  %v616_v20 = vld [vmem:[#allocation7 + $0x30] sm:$0xff] }
 0x1c7   :  { %v757_v1 = vadd.f32 %v749_v63, %v725_v54  ;;  %v708_v27 = vadd.f32 %v700_v0, %v676_v62  ;;  %v775_v62 = vmul.f32 %v615_v16, %v1100_v40  ;;  %v632_v63 = vmul.f32 %v616_v20, %v1094_v39 }
 0x1c8   :  { %v689_v2 = vpop.permute.xlu1 %688  ;;  %v783_v26 = vpop.permute.xlu0 %782 }
 0x1c9   :  { %765 = vst [vmem:[#allocation10 + $0x70] sm:$0xff] %v757_v1  ;;  %716 = vst [vmem:[#allocation10 + $0x48] sm:$0xff] %v708_v27  ;;  %v701_v5 = vmul.f32 %v689_v2, %v621_v19  ;;  %v796_v6 = vmul.f32 %v783_v26, %v620_v15  ;;  %v617_v1 = vld [vmem:[#allocation7 + $0x38] sm:$0xff] }
 0x1cb   :  { %v709_v8 = vadd.f32 %v701_v5, %v677_v3  ;;  %v804_v25 = vadd.f32 %v796_v6, %v772_v4  ;;  %v633_v4 = vmul.f32 %v617_v1, %v1110_v43  ;;  %v728_v5 = vmul.f32 %v616_v20, %v1104_v42 }
 0x1cc   :  { %v785_v9 = vpop.permute.xlu1 %784  ;;  %v643_v10 = vpop.permute.xlu0 %642 }
 0x1cd   :  { %717 = vst [vmem:[#allocation10 + $0x68] sm:$0xff] %v709_v8  ;;  %812 = vst [vmem:[#allocation10 + $0x58] sm:$0xff] %v804_v25  ;;  %v797_v13 = vmul.f32 %v785_v9, %v621_v19  ;;  %v654_v30 = vmul.f32 %v643_v10, %v622_v29  ;;  %v727_v19 = vmul.f32 %v615_v16, %v1086_v37  ;;  %v624_v37 = vld [vmem:[#allocation8 + $0x30] sm:$0xff] }
 0x1ce   :  { %v729_v25 = vmul.f32 %v617_v1, %v1118_v45  ;;  %v680_v9 = vmul.f32 %v616_v20, %v1102_v41  ;;  %v776_v16 = vmul.f32 %v616_v20, %v1112_v44  ;;  %v777_v41 = vmul.f32 %v617_v1, %v1130_v47 }
 0x1cf   :  { %v805_v14 = vadd.f32 %v797_v13, %v773_v11  ;;  %v662_v17 = vadd.f32 %v654_v30, %v630_v12  ;;  %v681_v30 = vmul.f32 %v617_v1, %v1124_v46 }
 0x1d0   :  { %v645_v18 = vpop.permute.xlu1 %644  ;;  %v739_v15 = vpop.permute.xlu0 %738 }
 0x1d1   :  { %813 = vst [vmem:[#allocation10 + $0x78] sm:$0xff] %v805_v14  ;;  %670 = vst [vmem:[#allocation10 + $0x80] sm:$0xff] %v662_v17  ;;  %v655_v50 = vmul.f32 %v645_v18, %v623_v28  ;;  %v750_v32 = vmul.f32 %v739_v15, %v622_v29 }
 0x1d3   :  { %v663_v51 = vadd.f32 %v655_v50, %v631_v21  ;;  %v758_v31 = vadd.f32 %v750_v32, %v726_v22 }
 0x1d4   :  { %v741_v23 = vpop.permute.xlu1 %740  ;;  %v691_v52 = vpop.permute.xlu0 %690 }
 0x1d5   :  { %671 = vst [vmem:[#allocation10 + $0xa0] sm:$0xff] %v663_v51  ;;  %766 = vst [vmem:[#allocation10 + $0x90] sm:$0xff] %v758_v31  ;;  %v751_v55 = vmul.f32 %v741_v23, %v623_v28  ;;  %v702_v56 = vmul.f32 %v691_v52, %v622_v29 }
 0x1d7   :  { %v759_v48 = vadd.f32 %v751_v55, %v727_v19  ;;  %v710_v35 = vadd.f32 %v702_v56, %v678_v49 }
 0x1d8   :  { %v693_v57 = vpop.permute.xlu1 %692  ;;  %v787_v34 = vpop.permute.xlu0 %786 }
 0x1d9   :  { %767 = vst [vmem:[#allocation10 + $0xb0] sm:$0xff] %v759_v48  ;;  %718 = vst [vmem:[#allocation10 + $0x88] sm:$0xff] %v710_v35  ;;  %v703_v24 = vmul.f32 %v693_v57, %v623_v28  ;;  %v798_v60 = vmul.f32 %v787_v34, %v622_v29 }
 0x1db   :  { %v711_v53 = vadd.f32 %v703_v24, %v679_v58  ;;  %v806_v33 = vadd.f32 %v798_v60, %v774_v59 }
 0x1dc   :  { %v789_v61 = vpop.permute.xlu1 %788  ;;  %v647_v54 = vpop.permute.xlu0 %646 }
 0x1dd   :  { %719 = vst [vmem:[#allocation10 + $0xa8] sm:$0xff] %v711_v53  ;;  %814 = vst [vmem:[#allocation10 + $0x98] sm:$0xff] %v806_v33  ;;  %v799_v0 = vmul.f32 %v789_v61, %v623_v28  ;;  %v656_v38 = vmul.f32 %v647_v54, %v624_v37 }
 0x1df   :  { %v807_v27 = vadd.f32 %v799_v0, %v775_v62  ;;  %v664_v2 = vadd.f32 %v656_v38, %v632_v63 }
 0x1e0   :  { %v649_v26 = vpop.permute.xlu1 %648  ;;  %v743_v3 = vpop.permute.xlu0 %742 }
 0x1e1   :  { %815 = vst [vmem:[#allocation10 + $0xb8] sm:$0xff] %v807_v27  ;;  %672 = vst [vmem:[#allocation10 + $0xc0] sm:$0xff] %v664_v2  ;;  %v657_v6 = vmul.f32 %v649_v26, %v625_v36  ;;  %v752_v40 = vmul.f32 %v743_v3, %v624_v37 }
 0x1e3   :  { %v665_v7 = vadd.f32 %v657_v6, %v633_v4  ;;  %v760_v39 = vadd.f32 %v752_v40, %v728_v5 }
 0x1e4   :  { %v745_v29 = vpop.permute.xlu1 %744  ;;  %v695_v8 = vpop.permute.xlu0 %694 }
 0x1e5   :  { %673 = vst [vmem:[#allocation10 + $0xe0] sm:$0xff] %v665_v7  ;;  %768 = vst [vmem:[#allocation10 + $0xd0] sm:$0xff] %v760_v39  ;;  %v753_v10 = vmul.f32 %v745_v29, %v625_v36  ;;  %v704_v11 = vmul.f32 %v695_v8, %v624_v37 }
 0x1e7   :  { %v761_v12 = vadd.f32 %v753_v10, %v729_v25  ;;  %v712_v43 = vadd.f32 %v704_v11, %v680_v9 }
 0x1e8   :  { %v697_v13 = vpop.permute.xlu1 %696  ;;  %v791_v42 = vpop.permute.xlu0 %790 }
 0x1e9   :  { %769 = vst [vmem:[#allocation10 + $0xf0] sm:$0xff] %v761_v12  ;;  %720 = vst [vmem:[#allocation10 + $0xc8] sm:$0xff] %v712_v43  ;;  %v705_v28 = vmul.f32 %v697_v13, %v625_v36  ;;  %v800_v14 = vmul.f32 %v791_v42, %v624_v37 }
 0x1eb   :  { %v713_v17 = vadd.f32 %v705_v28, %v681_v30  ;;  %v808_v45 = vadd.f32 %v800_v14, %v776_v16 }
 0x1ec   :  { %v793_v18 = vpop.permute.xlu1 %792 }
 0x1ed   :  { %721 = vst [vmem:[#allocation10 + $0xe8] sm:$0xff] %v713_v17  ;;  %816 = vst [vmem:[#allocation10 + $0xd8] sm:$0xff] %v808_v45  ;;  %v801_v15 = vmul.f32 %v793_v18, %v625_v36 }
 0x1ef   :  { %v809_v21 = vadd.f32 %v801_v15, %v777_v41 }
 0x1f1   :  { %817 = vst [vmem:[#allocation10 + $0xf8] sm:$0xff] %v809_v21 }
 0x1f2   :  { %941 = shalt.err (!%p938_p10)
}
 0x1f3   :  { %829 = dma.vmem_to_hbm [thread:$0]  %s824_s13, 4096, %s1180_s4, [#allocation4], %s959_s18, %s959_s18, %s960_s19  }
 0x1f4   :  { %956 = dma.done.wait [#allocation4], 4096  }
 0x1f5   :  { %957 = vsyncadd [#allocation4], 4294963200 }
 0x1f6   :  { %833 = vsyncpa [#allocation3], 1 }
 0x1f7   :  { %834 = vsyncpa [#allocation6], 1 }
 0x1f8   :  { %835 = vsyncpa [#allocation9], 1 }
 0x1f9   :  { %836 = vsyncpa [#allocation4], 1 }

</bundles_post_ra>
